<compile_context>
chip_gen: v7x
topology: tpu7x:2x2x1
jax: 0.10.0
libtpu: 0.0.40
codegen_flags: <defaults>
</compile_context>

<pallas_src>
import math

import jax
import jax.numpy as jnp
from jax import lax
from jax.experimental import pallas as pl
from jax.experimental.pallas import tpu as pltpu


# ---------------------------------------------------------------------------
# VMEM budgeting helpers
# ---------------------------------------------------------------------------
def _default_vmem_limit():
    try:
        cap = int(pltpu.get_tpu_info().vmem_capacity_bytes)
    except Exception:
        cap = 64 * 1024 * 1024          # conservative fallback: v7x per-core VMEM
    # ~48 MiB on v7x (64 MiB physical), 96 MiB on v5e/v6e (128 MiB physical)
    return min((cap * 3) // 4, 96 * 1024 * 1024)


def _pick_row_tile(Hout, Wout, C, O, KKC, Hp, Wp, in_bytes, out_bytes, K, vmem_budget):
    """Number of output rows per grid step.

    Keeps th*Wout a multiple of 128 (lane-dense stores), caps the in-kernel
    unrolled im2col loop, and stays inside the per-generation VMEM budget.
    Raggedness (Hout % th != 0) is handled by cdiv + masked last block.
    """
    g = math.gcd(Wout, 128)
    th_base = 128 // g
    if th_base >= Hout:
        return Hout                      # single full-extent tile (legal block)

    # double-buffered fixed blocks: per-sample padded image + per-sample weights
    fixed = 2 * C * Hp * Wp * in_bytes + 2 * O * KKC * in_bytes + (1 << 20)
    per_row = Wout * (2 * O * out_bytes + KKC * in_bytes + O * 4 + C * in_bytes)
    avail = max(vmem_budget - fixed, per_row * th_base)
    th_mem = max(th_base, int(avail // per_row))
    th_lane = max(th_base, 4096 // max(Wout, 1))       # amortization plateaus
    th_unroll = max(th_base, 256 // (K * K))            # bound trace size
    th = min(th_mem, th_lane, th_unroll, Hout)
    th = max(th_base, (th // th_base) * th_base)
    return min(th, Hout)


# ---------------------------------------------------------------------------
# Kernel 1: kernel_generator tail = 1x1 conv -> ReLU -> 1x1 conv on the pooled
# features.  The global average pool (AdaptiveAvgPool2d(1)) stays in XLA as a
# streaming HBM reduction.  The OCKK axis is tiled lane-dense so w2t never has
# to live in VMEM as one block (matters when O*C*K*K is large).
# ---------------------------------------------------------------------------
def kernel_generator_pallas(pool, w1t, b1, w2t, b2, *, vmem_limit):
    B, C = pool.shape
    C4 = w1t.shape[1]
    OCKK = w2t.shape[1]
    tile = OCKK if OCKK <= 2048 else 2048     # full extent (legal) or 128-multiple
    n_g = pl.cdiv(OCKK, tile)

    def gen_kernel(p_ref, w1_ref, b1_ref, w2_ref, b2_ref, o_ref):
        # Hidden layer is tiny (B x C4); recomputing it per OCKK tile is free.
        h = jnp.dot(p_ref[...], w1_ref[...], preferred_element_type=jnp.float32)
        h = jnp.maximum(h + b1_ref[...], 0.0)                               # ReLU
        kw = jnp.dot(h, w2_ref[...], preferred_element_type=jnp.float32)
        o_ref[...] = (kw + b2_ref[...]).astype(o_ref.dtype)

    return pl.pallas_call(
        gen_kernel,
        out_shape=jax.ShapeDtypeStruct((B, OCKK), jnp.float32),
        grid=(n_g,),
        in_specs=[
            pl.BlockSpec((B, C), lambda i: (0, 0)),
            pl.BlockSpec((C, C4), lambda i: (0, 0)),
            pl.BlockSpec((1, C4), lambda i: (0, 0)),
            pl.BlockSpec((C4, tile), lambda i: (0, i)),
            pl.BlockSpec((1, tile), lambda i: (0, i)),
        ],
        out_specs=pl.BlockSpec((B, tile), lambda i: (0, i)),
        compiler_params=pltpu.CompilerParams(
            dimension_semantics=("parallel",),
            vmem_limit_bytes=int(vmem_limit),
        ),
    )(pool, w1t, b1, w2t, b2)


# ---------------------------------------------------------------------------
# Kernel 2: per-sample dynamic conv2d.
#   grid = (B, ceil(Hout / th)); each step covers `th` whole output rows.
#   The padded image for sample b is DMA'd once (index constant over the inner
#   axis) and the (KK*C, th*Wout) column matrix is built in a VMEM scratch.
# ---------------------------------------------------------------------------
def dynamic_conv_pallas(x, dyn_w, bias, *, kernel_size, stride=1, padding=0,
                        dilation=1, compute_dtype=jnp.bfloat16, vmem_limit=None):
    B, C, H, W = x.shape
    O = dyn_w.shape[1]
    K = kernel_size
    Hout = (H + 2 * padding - dilation * (K - 1) - 1) // stride + 1
    Wout = (W + 2 * padding - dilation * (K - 1) - 1) // stride + 1
    HWo = Hout * Wout
    KK = K * K
    KKC = KK * C

    if vmem_limit is None:
        vmem_limit = _default_vmem_limit()
    in_bytes = jnp.dtype(compute_dtype).itemsize
    out_bytes = 4

    Wp = W + 2 * padding
    Hp_sym = H + 2 * padding
    th = _pick_row_tile(Hout, Wout, C, O, KKC, Hp_sym, Wp,
                        in_bytes, out_bytes, K, int(vmem_limit * 0.85))
    n_ht = pl.cdiv(Hout, th)
    TW = th * Wout

    # Pad H far enough that the ragged last row-tile only reads in-bounds rows
    # (its extra output rows are masked away by the output writeback anyway).
    Hp = max(Hp_sym, (n_ht * th - 1) * stride + (K - 1) * dilation + 1)
    # Cast BEFORE padding so the only HBM intermediate is written once in bf16.
    x_pad = jnp.pad(x.astype(compute_dtype),
                    ((0, 0), (0, 0),
                     (padding, Hp - H - padding),
                     (padding, padding)))

    # (B, O, C, K, K) -> (B, O, K, K, C) -> (B, O, KK*C): tap-major, matches xcol.
    w_mat = jnp.transpose(dyn_w, (0, 1, 3, 4, 2)).reshape(B, O, KKC).astype(compute_dtype)
    bias2d = bias.reshape(O, 1).astype(jnp.float32)

    def conv_kernel(xp_ref, w_ref, b_ref, o_ref, xcol_ref):
        r0 = pl.multiple_of(pl.program_id(1) * th, th)       # first output row
        # ---- in-kernel im2col into VMEM scratch (no KK x HBM inflation) ----
        for kh in range(K):
            h0 = r0 * stride + kh * dilation
            for kw in range(K):
                idx = kh * K + kw
                w0 = kw * dilation
                if stride == 1:
                    tap = xp_ref[:, pl.ds(h0, th), pl.ds(w0, Wout)]
                else:
                    # TODO(synk): lane-strided loads (stride > 1) are correct but slow;
                    # a production stride>1 path should pre-decimate W outside the kernel.
                    tap = xp_ref[:, pl.ds(h0, th, stride), pl.ds(w0, Wout, stride)]
                # tap: (C, th, Wout) -> row strips of the (KK*C, th*Wout) matrix
                for j in range(th):
                    xcol_ref[pl.ds(idx * C, C), pl.ds(j * Wout, Wout)] = tap[:, j, :]
        # ---- one fat MXU matmul per grid step (f32 accumulation) ----
        # NOTE: M = O; for production models keep O >= 32 (or pad O) so the MXU
        # rows are not mostly idle.
        acc = jnp.dot(w_ref[...], xcol_ref[...], preferred_element_type=jnp.float32)
        o_ref[...] = (acc + b_ref[...]).astype(o_ref.dtype)

    out = pl.pallas_call(
        conv_kernel,
        out_shape=jax.ShapeDtypeStruct((B, O, HWo), jnp.float32),
        grid=(B, n_ht),
        in_specs=[
            # Full per-sample padded image; index constant over the inner axis,
            # so it is DMA'd once per sample and reused across all row tiles.
            # TODO(synk): for very large images add H-halo tiling of x_pad so a
            # single sample never has to fit VMEM in one block.
            pl.BlockSpec((pl.Squeezed(), C, Hp, Wp), lambda b, t: (b, 0, 0, 0)),
            pl.BlockSpec((pl.Squeezed(), O, KKC), lambda b, t: (b, 0, 0)),
            pl.BlockSpec((O, 1), lambda b, t: (0, 0)),
        ],
        out_specs=pl.BlockSpec((pl.Squeezed(), O, TW), lambda b, t: (b, 0, t)),
        scratch_shapes=[pltpu.VMEM((KKC, TW), compute_dtype)],
        compiler_params=pltpu.CompilerParams(
            dimension_semantics=("parallel", "parallel"),
            vmem_limit_bytes=int(vmem_limit),
        ),
    )(x_pad, w_mat, bias2d)
    return out.reshape(B, O, Hout, Wout)


# ---------------------------------------------------------------------------
# Module wrapper (parameter setup is plain JAX glue)
# ---------------------------------------------------------------------------
class DynamicConv2D:
    def __init__(self, in_channels, out_channels, kernel_size, stride=1, padding=0,
                 dilation=1, groups=1, bias=True, key=None,
                 compute_dtype=jnp.bfloat16):
        assert groups == 1  # TODO(synk): grouped dynamic conv (groups > 1) not implemented
        self.in_channels = in_channels
        self.out_channels = out_channels
        self.kernel_size = kernel_size
        self.stride = stride
        self.padding = padding
        self.dilation = dilation
        # bf16 is the production default (halves DMA bytes, native MXU dtype);
        # accumulation stays f32 via preferred_element_type.
        self.compute_dtype = compute_dtype
        self.vmem_limit = _default_vmem_limit()

        mid = in_channels // 4
        ockk = out_channels * in_channels * kernel_size * kernel_size
        k1, k2, k3, k4, k5 = jax.random.split(key, 5)
        # torch Conv2d(C, C//4, 1) weight stored pre-transposed as (C, C//4)
        self.w1t = 0.1 * jax.random.normal(k1, (in_channels, mid), jnp.float32)
        self.b1 = 0.1 * jax.random.normal(k2, (1, mid), jnp.float32)
        # torch Conv2d(C//4, O*C*K*K, 1) weight stored pre-transposed as (C//4, O*C*K*K)
        self.w2t = 0.1 * jax.random.normal(k3, (mid, ockk), jnp.float32)
        self.b2 = 0.1 * jax.random.normal(k4, (1, ockk), jnp.float32)
        self.bias = (0.1 * jax.random.normal(k5, (out_channels,), jnp.float32)
                     if bias else jnp.zeros((out_channels,), jnp.float32))

    def __call__(self, x):
        B = x.shape[0]
        # AdaptiveAvgPool2d(1): streaming HBM-bound reduction, left to XLA.
        pool = jnp.mean(x.astype(jnp.float32), axis=(2, 3))
        kwv = kernel_generator_pallas(pool, self.w1t, self.b1, self.w2t, self.b2,
                                      vmem_limit=self.vmem_limit)
        dyn_w = kwv.reshape(B, self.out_channels, self.in_channels,
                            self.kernel_size, self.kernel_size)
        return dynamic_conv_pallas(x, dyn_w, self.bias,
                                   kernel_size=self.kernel_size, stride=self.stride,
                                   padding=self.padding, dilation=self.dilation,
                                   compute_dtype=self.compute_dtype,
                                   vmem_limit=self.vmem_limit)


# Pure-JAX f32 reference (mirrors the PyTorch forward exactly) for validation.
def reference_forward(x, mod):
    pool = x.mean(axis=(2, 3))
    h = jnp.maximum(pool @ mod.w1t + mod.b1, 0.0)
    kwv = h @ mod.w2t + mod.b2
    B = x.shape[0]
    dyn_w = kwv.reshape(B, mod.out_channels, mod.in_channels,
                        mod.kernel_size, mod.kernel_size)
    outs = []
    for i in range(B):
        o = lax.conv_general_dilated(
            x[i:i + 1], dyn_w[i],
            window_strides=(mod.stride, mod.stride),
            padding=[(mod.padding, mod.padding)] * 2,
            rhs_dilation=(mod.dilation, mod.dilation),
            dimension_numbers=('NCHW', 'OIHW', 'NCHW'))
        outs.append(o)
    return jnp.concatenate(outs, axis=0) + mod.bias.reshape(1, -1, 1, 1)


if __name__ == "__main__":
    key = jax.random.PRNGKey(0)
    kx, kp = jax.random.split(key)

    B, C, H, W = 2, 4, 16, 16
    O, K = 4, 3

    x = jax.random.normal(kx, (B, C, H, W), jnp.float32)
    mod = DynamicConv2D(C, O, K, stride=1, padding=1, bias=True, key=kp)

    ref = reference_forward(x, mod)

    # Production default: bf16 operands, f32 accumulation (looser tolerance).
    out_bf16 = jax.block_until_ready(mod(x))
    assert out_bf16.shape == (B, O, H, W), out_bf16.shape
    err_bf16 = float(jnp.max(jnp.abs(out_bf16 - ref)))
    assert err_bf16 < 5e-2, f"bf16 path mismatch vs reference: {err_bf16}"

    # Exact-arithmetic check of the kernel logic.
    mod.compute_dtype = jnp.float32
    out_f32 = jax.block_until_ready(mod(x))
    err_f32 = float(jnp.max(jnp.abs(out_f32 - ref)))
    assert err_f32 < 1e-3, f"f32 path mismatch vs reference: {err_f32}"

    print("KERNEL_OK")
</pallas_src>

<mosaic_0001>
module attributes {stable_mosaic.version = 11 : i64} {
  func.func @gen_kernel(%arg0: i32, %arg1: memref<2x4xf32, #tpu.memory_space<vmem>>, %arg2: memref<4x1xf32, #tpu.memory_space<vmem>>, %arg3: memref<1x1xf32, #tpu.memory_space<vmem>>, %arg4: memref<1x144xf32, #tpu.memory_space<vmem>>, %arg5: memref<1x144xf32, #tpu.memory_space<vmem>>, %arg6: memref<2x144xf32, #tpu.memory_space<vmem>>) attributes {dimension_semantics = [#tpu.dimension_semantics<parallel>], iteration_bounds = array<i64: 1>, scalar_prefetch = 0 : i64, scratch_operands = 0 : i64, tpu.core_type = #tpu.core_type<tc>, window_params = [{pipeline_mode = #tpu.pipeline_mode<synchronous>, transform_indices = @transform_0, window_bounds = array<i64: 2, 4>}, {pipeline_mode = #tpu.pipeline_mode<synchronous>, transform_indices = @transform_1, window_bounds = array<i64: 4, 1>}, {pipeline_mode = #tpu.pipeline_mode<synchronous>, transform_indices = @transform_2, window_bounds = array<i64: 1, 1>}, {transform_indices = @transform_3, window_bounds = array<i64: 1, 144>}, {transform_indices = @transform_4, window_bounds = array<i64: 1, 144>}, {transform_indices = @transform_5, window_bounds = array<i64: 2, 144>}]} {
    %c0 = arith.constant 0 : index
    %c0_0 = arith.constant 0 : index
    %0 = vector.load %arg1[%c0, %c0_0] : memref<2x4xf32, #tpu.memory_space<vmem>>, vector<2x4xf32>
    %c0_1 = arith.constant 0 : index
    %c0_2 = arith.constant 0 : index
    %1 = vector.load %arg2[%c0_1, %c0_2] : memref<4x1xf32, #tpu.memory_space<vmem>>, vector<4x1xf32>
    %cst = arith.constant dense<0.000000e+00> : vector<2x1xf32>
    %2 = tpu.matmul %0, %1, %cst {dimension_numbers = #tpu.dot_dimension_numbers<[1], [0], [0], [1], [0, 0, 1, 1], [], []>} : vector<2x4xf32>, vector<4x1xf32>, vector<2x1xf32> -> vector<2x1xf32>
    %c0_3 = arith.constant 0 : index
    %c0_4 = arith.constant 0 : index
    %3 = vector.load %arg3[%c0_3, %c0_4] : memref<1x1xf32, #tpu.memory_space<vmem>>, vector<1x1xf32>
    %4 = vector.broadcast %3 : vector<1x1xf32> to vector<2x1xf32>
    %5 = arith.addf %2, %4 : vector<2x1xf32>
    %cst_5 = arith.constant 0.000000e+00 : f32
    %6 = vector.broadcast %cst_5 : f32 to vector<2x1xf32>
    %7 = arith.maximumf %5, %6 : vector<2x1xf32>
    %c0_6 = arith.constant 0 : index
    %c0_7 = arith.constant 0 : index
    %8 = vector.load %arg4[%c0_6, %c0_7] : memref<1x144xf32, #tpu.memory_space<vmem>>, vector<1x144xf32>
    %cst_8 = arith.constant dense<0.000000e+00> : vector<2x144xf32>
    %9 = tpu.matmul %7, %8, %cst_8 {dimension_numbers = #tpu.dot_dimension_numbers<[1], [0], [0], [1], [0, 0, 1, 1], [], []>} : vector<2x1xf32>, vector<1x144xf32>, vector<2x144xf32> -> vector<2x144xf32>
    %c0_9 = arith.constant 0 : index
    %c0_10 = arith.constant 0 : index
    %10 = vector.load %arg5[%c0_9, %c0_10] : memref<1x144xf32, #tpu.memory_space<vmem>>, vector<1x144xf32>
    %11 = vector.broadcast %10 : vector<1x144xf32> to vector<2x144xf32>
    %12 = arith.addf %9, %11 : vector<2x144xf32>
    %c0_11 = arith.constant 0 : index
    %c0_12 = arith.constant 0 : index
    %13 = vector.load %arg6[%c0_11, %c0_12] : memref<2x144xf32, #tpu.memory_space<vmem>>, vector<2x144xf32>
    tpu.vector_store %arg6[%c0_11, %c0_12], %12 {strides = array<i32>} : memref<2x144xf32, #tpu.memory_space<vmem>>, vector<2x144xf32>,
    return
  }
  func.func @transform_0(%arg0: i32) -> (i32, i32) {
    %c0_i32 = arith.constant 0 : i32
    %c0_i32_0 = arith.constant 0 : i32
    %c0_i32_1 = arith.constant 0 : i32
    return %c0_i32, %c0_i32_0 : i32, i32
  }
  func.func @transform_1(%arg0: i32) -> (i32, i32) {
    %c0_i32 = arith.constant 0 : i32
    %c0_i32_0 = arith.constant 0 : i32
    %c0_i32_1 = arith.constant 0 : i32
    return %c0_i32, %c0_i32_0 : i32, i32
  }
  func.func @transform_2(%arg0: i32) -> (i32, i32) {
    %c0_i32 = arith.constant 0 : i32
    %c0_i32_0 = arith.constant 0 : i32
    %c0_i32_1 = arith.constant 0 : i32
    return %c0_i32, %c0_i32_0 : i32, i32
  }
  func.func @transform_3(%arg0: i32) -> (i32, i32) {
    %c0_i32 = arith.constant 0 : i32
    %c0_i32_0 = arith.constant 0 : i32
    return %c0_i32, %arg0 : i32, i32
  }
  func.func @transform_4(%arg0: i32) -> (i32, i32) {
    %c0_i32 = arith.constant 0 : i32
    %c0_i32_0 = arith.constant 0 : i32
    return %c0_i32, %arg0 : i32, i32
  }
  func.func @transform_5(%arg0: i32) -> (i32, i32) {
    %c0_i32 = arith.constant 0 : i32
    %c0_i32_0 = arith.constant 0 : i32
    return %c0_i32, %arg0 : i32, i32
  }
}

</mosaic_0001>

<bundles_post_ra>
// kernel: tpu_custom_call.1
= control target key start
LH: loop header
LB: loop body
LE: loop exit
PB: predicated region body
PF: predicated region fallthrough
CT: control target
= control target key end

     0   :  { %s344_s0 = inlined_call_operand.vmem [shape: f32[2,4], index: 0, kind: input, shape index: {}]   ;;  %s345_s1 = inlined_call_operand.vmem [shape: f32[4,1], index: 1, kind: input, shape index: {}]   ;;  %s346_s2 = inlined_call_operand.<no memory space> [shape: f32[1,1], index: 2, kind: input, shape index: {}]   ;;  %s347_s3 = inlined_call_operand.vmem [shape: f32[1,144], index: 3, kind: input, shape index: {}]   ;;  %s348_s4 = inlined_call_operand.vmem [shape: f32[1,144], index: 4, kind: input, shape index: {}]   ;;  %s349_s5 = inlined_call_operand.hbm [shape: f32[2,144], index: 5, kind: output, shape index: {}]  }
   0x1   :  { %v10_v0 = vstv %s346_s2 }
   0x2   :  { %11 = vst [vmem:[#allocation2] sm:$0x1] %v10_v0 }
   0x3   :  { %v24_v1 = vld [vmem:[%s345_s1] sm:$0xf]  ;;  %vm36_vm0 = vcmask 1043456   ;;  %vm32_vm1 = vcmask 31744   ;;  %v283_v2 = vmov 0.0   ;;  %vm284_vm2 = vmmov 0  }
   0x4   :  { %250 = vmatprep.subr.mxu0 %v283_v2  ;;  %252 = vmatprep.mubr.msk.f32.mxu0 %vm284_vm2, %v283_v2  ;;  %v23_v3 = vld [vmem:[%s344_s0] sm:$0x3] }
   0x5   :  { %12 = vsyncpa [#allocation4], 0  ;;  %251 = vmatpush3.msk.msra.mxu0 %vm36_vm0, %v24_v1  ;;  %206 = vmatprep.mubr.f32.mxu1 %v283_v2  ;;  %v114_v4 = vlaneseq  ;;  %v111_v7 = vld [vmem:[%s347_s3] sm:$0x3]  ;;  %vm137_vm3 = vcmask 1040384   ;;  %vm133_vm4 = vcmask 7168  }
   0x6   :  { %253 = vmatmul.mubr.msk.f32.vlgmr.msra.gmra.mrb[0].mxu0 %vm32_vm1, %v23_v3  ;;  %v112_v16 = vld [vmem:[%s348_s4] sm:$0x3]  ;;  %v285_v17 = vmov 1983009808   ;;  %vm224_vm5 = vcmask 1041408   ;;  %vm225_vm6 = vcmask 125954  }
   0x7   :  { %v115_v5 = vshrl.u32 %v114_v4, 7  ;;  %v217_v18 = vunpack.c.l.s4 %v285_v17  ;;  %s286_s3 = smov [#allocation3]   ;;  %vm226_vm7 = vmor %vm225_vm6, %vm224_vm5 }
   0x8   :  { %s234_s25 = sshll.u32 %s286_s3, 4  ;;  %s235_s25 = int_to_ptr.vmem [resolvable:$true] %s234_s25 }
   0x9   :  { %v120_v6 = vsub.s32 1, %v115_v5  ;;  %v116_v8 = vsub.s32 0, %v115_v5  ;;  %v242_v11 = vld [vmem:[#allocation2] ss:$0 sm:$0xff]  ;;  %v218_v21 = vunpack.c.0.s8 %v217_v18  ;;  %s259_s4 = scalar_lea.vmem %s235_s25, 64  ;;  %p264_p1 = scmp.lt.s32.totalorder %s235_s25, %s235_s25 }
   0xa   :  { %p260_p0 = scmp.ne.s32.totalorder %s235_s25, %s259_s4  ;;  %p265_p2 = scmp.lt.s32.totalorder %s259_s4, %s259_s4 }
   0xb   :  { %v132_v9 = vrot.slane %v111_v7, %v120_v6  ;;  %v128_v10 = vrot.slane %v111_v7, %v116_v8  ;;  %v117_v19 = vrot.slane %v112_v16, %v116_v8  ;;  %v121_v20 = vrot.slane %v112_v16, %v120_v6 }
   0xc   :  { %v221_v26 = vsub.s32 %v218_v21, %v115_v5  ;;  %p266_p3 = por %p265_p2, %p264_p1 }
   0xd   :  { %245 = vmatprep.subr.msk.mxu1 %vm137_vm3, %v132_v9 }
   0xe   :  { %246 = vmatpush1.msk.msra.mxu1 %vm137_vm3, %v128_v10  ;;  %p267_p4 = pnand %p266_p3, %p260_p0 }
  0xd9   :  { %v106_v12 = vpop.f32.mrb[0].mxu0 }
  0xda   :  { %v107_v13 = vadd.f32 %v242_v11, %v106_v12  ;;  %v254_v14 = vpop.f32.mrb[1].mxu0 }
  0xdc   :  { %v110_v15 = vmax.f32 %v107_v13, 0.0 }
  0xde   :  { %247 = vmatmul.mubr.msk.f32.vlgmr.msra.gmra.mrb[0].mxu1 %vm133_vm4, %v110_v15 }
 0x1b1   :  { %v208_v22 = vpop.f32.mrb[0].mxu1 }
 0x1b2   :  { %v209_v23 = vadd.f32 %v208_v22, %v117_v19  ;;  %v210_v24 = vpop.f32.mrb[1].mxu1 }
 0x1b3   :  { %v211_v25 = vadd.f32 %v210_v24, %v121_v20 }
 0x1b5   :  { %v215_v27 = vcombine.low %v209_v23, %v211_v25 }
 0x1b7   :  { %v222_v28 = vrot.slane %v215_v27, %v221_v26 }
 0x1b9   :  { %227 = vst.msk [vmem:[#allocation3] sm:$0xf] %vm226_vm7, %v222_v28 }
 0x1ba   :  { %270 = shalt.err (!%p267_p4)
}
 0x1bb   :  { %s271_s28 = scalar_lea.hbm %s349_s5, 64 }
 0x1bc   :  { %p272_p5 = scmp.ne.s32.totalorder %s349_s5, %s271_s28  ;;  %p275_p6 = scmp.lt.u32.totalorder %s271_s28, %s349_s5 }
 0x1be   :  { %p277_p7 = pnand %p275_p6, %p272_p5 }
 0x1c0   :  { %280 = shalt.err (!%p277_p7)
}
 0x1c1   :  { %237 = dma.vmem_to_hbm [thread:$0]  %s235_s25, 64, %s349_s5, [#allocation4]  }
 0x1c2   :  { %281 = dma.done.wait [#allocation4], 64  }
 0x1c3   :  { %282 = vsyncadd [#allocation4], 4294967232 }
 0x1c4   :  { %241 = vsyncpa [#allocation4], 1 }

</bundles_post_ra>
